<compile_context>
chip_gen: v6e
topology: v6e:2x2x1
jax: 0.10.0
libtpu: 0.0.40
codegen_flags: <defaults>
</compile_context>

<pallas_src>
import jax
import jax.numpy as jnp
from jax.experimental import pallas as pl
from jax.experimental.pallas import tpu as pltpu


def _make_mean_kernel(num_inputs):
    """Kernel summing `num_inputs` same-shape VMEM tiles, then normalizing."""
    inv_k = float(1.0 / num_inputs)  # trace-time constant -> one vmul, no divide

    def kernel(*refs):
        in_refs = refs[:num_inputs]
        o_ref = refs[num_inputs]
        # Unrolled, vreg-resident accumulation in f32 (matches torch's
        # float mean numerics for float inputs).
        acc = in_refs[0][...].astype(jnp.float32)
        for r in in_refs[1:]:
            acc = acc + r[...].astype(jnp.float32)
        o_ref[...] = (acc * jnp.float32(inv_k)).astype(o_ref.dtype)

    return kernel


def mean_aggregator(features):
    """features: list of K arrays of identical shape (B, D). Returns (B, D) mean.

    Equivalent to torch.stack(features, dim=1).mean(1).
    """
    K = len(features)
    if K == 0:
        raise ValueError("MeanAggregator requires at least one input feature.")
    B, D = features[0].shape
    dtype = features[0].dtype
    N = B * D

    # --- choose a lane-dense 2D view --------------------------------------
    # The op is purely elementwise across the K arrays, so layout is free.
    if D % 128 != 0 and N % 128 == 0:
        # Re-view each (B, D) as (N/128, 128): unmasked, lane-dense stores.
        xs = [f.reshape(N // 128, 128) for f in features]
        R, C = N // 128, 128
    else:
        xs = list(features)
        R, C = B, D

    # --- tile the row dimension --------------------------------------------
    itemsize = jnp.dtype(dtype).itemsize
    sublane = max(8, 32 // itemsize)  # 8 for f32, 16 for bf16, 32 for int8/fp8
    # Resident-VMEM budget: K inputs double-buffered + output double-buffered.
    # 12 MiB stays comfortably below v7x's 64 MiB physical / 32 MiB scoped
    # default while keeping tiles large enough to hide per-step overhead.
    vmem_budget = 12 * 1024 * 1024
    row_bytes = C * itemsize
    max_tr = max(1, vmem_budget // ((2 * K + 2) * row_bytes))
    if max_tr >= R:
        tr = R  # whole array in one block (single grid step for small shapes)
    else:
        tr = max(sublane, (max_tr // sublane) * sublane)
    grid = (pl.cdiv(R, tr),)

    row_spec = lambda i: (i, 0)
    out = pl.pallas_call(
        _make_mean_kernel(K),
        out_shape=jax.ShapeDtypeStruct((R, C), dtype),
        grid_spec=pltpu.PrefetchScalarGridSpec(
            num_scalar_prefetch=0,
            grid=grid,
            in_specs=[pl.BlockSpec((tr, C), row_spec) for _ in range(K)],
            out_specs=pl.BlockSpec((tr, C), row_spec),
        ),
        compiler_params=pltpu.CompilerParams(
            # Row-tile axis is fully independent -> megacore split on v7x.
            dimension_semantics=("parallel",),
        ),
    )(*xs)

    return out.reshape(B, D)


if __name__ == "__main__":
    # MeanAggregator has no parameters; cfg only defines out_dim metadata.
    key = jax.random.PRNGKey(0)
    K = 8    # number of multi-input feature streams (len of the list)
    B = 2    # batch
    D = 32   # cfg.MODEL.MULTI_INPUT_FEATURES

    keys = jax.random.split(key, K)
    feats = [jax.random.normal(k, (B, D), dtype=jnp.float32) for k in keys]

    out = mean_aggregator(feats)
    out = jax.block_until_ready(out)

    # Sanity check against plain-JAX reference (torch.stack(...,1).mean(1)).
    ref = jnp.stack(feats, axis=1).mean(axis=1)
    assert out.shape == (B, D)
    assert jnp.allclose(out, ref, atol=1e-6, rtol=1e-6)

    print("KERNEL_OK")
</pallas_src>

<mosaic_0001>
module attributes {stable_mosaic.version = 11 : i64} {
  func.func @kernel(%arg0: i32, %arg1: memref<2x32xf32, #tpu.memory_space<vmem>>, %arg2: memref<2x32xf32, #tpu.memory_space<vmem>>, %arg3: memref<2x32xf32, #tpu.memory_space<vmem>>, %arg4: memref<2x32xf32, #tpu.memory_space<vmem>>, %arg5: memref<2x32xf32, #tpu.memory_space<vmem>>, %arg6: memref<2x32xf32, #tpu.memory_space<vmem>>, %arg7: memref<2x32xf32, #tpu.memory_space<vmem>>, %arg8: memref<2x32xf32, #tpu.memory_space<vmem>>, %arg9: memref<2x32xf32, #tpu.memory_space<vmem>>) attributes {dimension_semantics = [#tpu.dimension_semantics<parallel>], iteration_bounds = array<i64: 1>, scalar_prefetch = 0 : i64, scratch_operands = 0 : i64, tpu.core_type = #tpu.core_type<tc>, window_params = [{transform_indices = @transform_0, window_bounds = array<i64: 2, 32>}, {transform_indices = @transform_1, window_bounds = array<i64: 2, 32>}, {transform_indices = @transform_2, window_bounds = array<i64: 2, 32>}, {transform_indices = @transform_3, window_bounds = array<i64: 2, 32>}, {transform_indices = @transform_4, window_bounds = array<i64: 2, 32>}, {transform_indices = @transform_5, window_bounds = array<i64: 2, 32>}, {transform_indices = @transform_6, window_bounds = array<i64: 2, 32>}, {transform_indices = @transform_7, window_bounds = array<i64: 2, 32>}, {transform_indices = @transform_8, window_bounds = array<i64: 2, 32>}]} {
    %c0 = arith.constant 0 : index
    %c0_0 = arith.constant 0 : index
    %0 = vector.load %arg1[%c0, %c0_0] : memref<2x32xf32, #tpu.memory_space<vmem>>, vector<2x32xf32>
    %c0_1 = arith.constant 0 : index
    %c0_2 = arith.constant 0 : index
    %1 = vector.load %arg2[%c0_1, %c0_2] : memref<2x32xf32, #tpu.memory_space<vmem>>, vector<2x32xf32>
    %2 = arith.addf %0, %1 : vector<2x32xf32>
    %c0_3 = arith.constant 0 : index
    %c0_4 = arith.constant 0 : index
    %3 = vector.load %arg3[%c0_3, %c0_4] : memref<2x32xf32, #tpu.memory_space<vmem>>, vector<2x32xf32>
    %4 = arith.addf %2, %3 : vector<2x32xf32>
    %c0_5 = arith.constant 0 : index
    %c0_6 = arith.constant 0 : index
    %5 = vector.load %arg4[%c0_5, %c0_6] : memref<2x32xf32, #tpu.memory_space<vmem>>, vector<2x32xf32>
    %6 = arith.addf %4, %5 : vector<2x32xf32>
    %c0_7 = arith.constant 0 : index
    %c0_8 = arith.constant 0 : index
    %7 = vector.load %arg5[%c0_7, %c0_8] : memref<2x32xf32, #tpu.memory_space<vmem>>, vector<2x32xf32>
    %8 = arith.addf %6, %7 : vector<2x32xf32>
    %c0_9 = arith.constant 0 : index
    %c0_10 = arith.constant 0 : index
    %9 = vector.load %arg6[%c0_9, %c0_10] : memref<2x32xf32, #tpu.memory_space<vmem>>, vector<2x32xf32>
    %10 = arith.addf %8, %9 : vector<2x32xf32>
    %c0_11 = arith.constant 0 : index
    %c0_12 = arith.constant 0 : index
    %11 = vector.load %arg7[%c0_11, %c0_12] : memref<2x32xf32, #tpu.memory_space<vmem>>, vector<2x32xf32>
    %12 = arith.addf %10, %11 : vector<2x32xf32>
    %c0_13 = arith.constant 0 : index
    %c0_14 = arith.constant 0 : index
    %13 = vector.load %arg8[%c0_13, %c0_14] : memref<2x32xf32, #tpu.memory_space<vmem>>, vector<2x32xf32>
    %14 = arith.addf %12, %13 : vector<2x32xf32>
    %cst = arith.constant 1.250000e-01 : f32
    %15 = vector.broadcast %cst : f32 to vector<2x32xf32>
    %16 = arith.mulf %14, %15 : vector<2x32xf32>
    %c0_15 = arith.constant 0 : index
    %c0_16 = arith.constant 0 : index
    %17 = vector.load %arg9[%c0_15, %c0_16] : memref<2x32xf32, #tpu.memory_space<vmem>>, vector<2x32xf32>
    tpu.vector_store %arg9[%c0_15, %c0_16], %16 {strides = array<i32>} : memref<2x32xf32, #tpu.memory_space<vmem>>, vector<2x32xf32>,
    return
  }
  func.func @transform_0(%arg0: i32) -> (i32, i32) {
    %c0_i32 = arith.constant 0 : i32
    %c0_i32_0 = arith.constant 0 : i32
    return %arg0, %c0_i32 : i32, i32
  }
  func.func @transform_1(%arg0: i32) -> (i32, i32) {
    %c0_i32 = arith.constant 0 : i32
    %c0_i32_0 = arith.constant 0 : i32
    return %arg0, %c0_i32 : i32, i32
  }
  func.func @transform_2(%arg0: i32) -> (i32, i32) {
    %c0_i32 = arith.constant 0 : i32
    %c0_i32_0 = arith.constant 0 : i32
    return %arg0, %c0_i32 : i32, i32
  }
  func.func @transform_3(%arg0: i32) -> (i32, i32) {
    %c0_i32 = arith.constant 0 : i32
    %c0_i32_0 = arith.constant 0 : i32
    return %arg0, %c0_i32 : i32, i32
  }
  func.func @transform_4(%arg0: i32) -> (i32, i32) {
    %c0_i32 = arith.constant 0 : i32
    %c0_i32_0 = arith.constant 0 : i32
    return %arg0, %c0_i32 : i32, i32
  }
  func.func @transform_5(%arg0: i32) -> (i32, i32) {
    %c0_i32 = arith.constant 0 : i32
    %c0_i32_0 = arith.constant 0 : i32
    return %arg0, %c0_i32 : i32, i32
  }
  func.func @transform_6(%arg0: i32) -> (i32, i32) {
    %c0_i32 = arith.constant 0 : i32
    %c0_i32_0 = arith.constant 0 : i32
    return %arg0, %c0_i32 : i32, i32
  }
  func.func @transform_7(%arg0: i32) -> (i32, i32) {
    %c0_i32 = arith.constant 0 : i32
    %c0_i32_0 = arith.constant 0 : i32
    return %arg0, %c0_i32 : i32, i32
  }
  func.func @transform_8(%arg0: i32) -> (i32, i32) {
    %c0_i32 = arith.constant 0 : i32
    %c0_i32_0 = arith.constant 0 : i32
    return %arg0, %c0_i32 : i32, i32
  }
}

</mosaic_0001>

<bundles_post_ra>
// kernel: tpu_custom_call.1
= control target key start
LH: loop header
LB: loop body
LE: loop exit
PB: predicated region body
PF: predicated region fallthrough
CT: control target
= control target key end

     0   :  { %13 = vsyncpa [#allocation3], 0  ;;  %s232_s0 = inlined_call_operand.hbm [shape: f32[2,32], index: 0, kind: input, shape index: {}]   ;;  %s233_s1 = inlined_call_operand.hbm [shape: f32[2,32], index: 1, kind: input, shape index: {}]   ;;  %s234_s2 = inlined_call_operand.vmem [shape: f32[2,32], index: 2, kind: input, shape index: {}]   ;;  %s235_s3 = inlined_call_operand.vmem [shape: f32[2,32], index: 3, kind: input, shape index: {}]   ;;  %s236_s4 = inlined_call_operand.vmem [shape: f32[2,32], index: 4, kind: input, shape index: {}]   ;;  %s237_s5 = inlined_call_operand.vmem [shape: f32[2,32], index: 5, kind: input, shape index: {}]   ;;  %s238_s6 = inlined_call_operand.vmem [shape: f32[2,32], index: 6, kind: input, shape index: {}]   ;;  %s239_s7 = inlined_call_operand.vmem [shape: f32[2,32], index: 7, kind: input, shape index: {}]   ;;  %s240_s8 = inlined_call_operand.hbm [shape: f32[2,32], index: 8, kind: output, shape index: {}]  }
   0x1   :  { %14 = vsyncpa [#allocation6], 0 }
   0x2   :  { %15 = vsyncpa [#allocation4], 0  ;;  %s157_s27 = smov [#allocation2]   ;;  %s158_s29 = smov [#allocation5]  }
   0x3   :  { %s22_s28 = sshll.u32 %s157_s27, 4  ;;  %s32_s30 = sshll.u32 %s158_s29, 4  ;;  %s23_s28 = int_to_ptr.vmem [resolvable:$true] %s22_s28  ;;  %s33_s30 = int_to_ptr.vmem [resolvable:$true] %s32_s30 }
   0x4   :  { %s99_s9 = scalar_lea.vmem %s23_s28, 32  ;;  %p104_p1 = scmp.lt.s32.totalorder %s23_s28, %s23_s28 }
   0x5   :  { %p100_p0 = scmp.ne.s32.totalorder %s23_s28, %s99_s9  ;;  %p105_p2 = scmp.lt.s32.totalorder %s99_s9, %s99_s9 }
   0x7   :  { %p106_p3 = por %p105_p2, %p104_p1 }
   0x9   :  { %p107_p4 = pnand %p106_p3, %p100_p0 }
   0xb   :  { %110 = shalt.err (!%p107_p4)
}
   0xc   :  { %25 = dma.hbm_to_vmem [thread:$0]  %s232_s0, 32, %s23_s28, [#allocation3]  }
   0xd   :  { %s119_s12 = scalar_lea.vmem %s33_s30, 32  ;;  %p124_p6 = scmp.lt.s32.totalorder %s33_s30, %s33_s30 }
   0xe   :  { %p120_p5 = scmp.ne.s32.totalorder %s33_s30, %s119_s12  ;;  %p125_p7 = scmp.lt.s32.totalorder %s119_s12, %s119_s12 }
  0x10   :  { %p126_p8 = por %p125_p7, %p124_p6 }
  0x12   :  { %p127_p9 = pnand %p126_p8, %p120_p5 }
  0x14   :  { %130 = shalt.err (!%p127_p9)
}
  0x15   :  { %35 = dma.hbm_to_vmem [thread:$0]  %s233_s1, 32, %s33_s30, [#allocation6]  }
  0x16   :  { %151 = dma.done.wait [#allocation3], 32  }
  0x17   :  { %152 = vsyncadd [#allocation3], 4294967264 }
  0x18   :  { %153 = dma.done.wait [#allocation6], 32  }
  0x19   :  { %154 = vsyncadd [#allocation6], 4294967264  ;;  %v54_v0 = vld [vmem:[#allocation2] sm:$0x3]  ;;  %v55_v1 = vld [vmem:[#allocation5] sm:$0x3] }
  0x1a   :  { %v57_v2 = vld [vmem:[%s234_s2] sm:$0x3]  ;;  %v56_v3 = vadd.f32 %v55_v1, %v54_v0  ;;  %vm70_vm0 = vcmask 254976  }
  0x1b   :  { %v59_v4 = vld [vmem:[%s235_s3] sm:$0x3]  ;;  %s159_s3 = smov [#allocation7]  }
  0x1c   :  { %v58_v5 = vadd.f32 %v57_v2, %v56_v3  ;;  %v61_v6 = vld [vmem:[%s236_s4] sm:$0x3]  ;;  %s78_s24 = sshll.u32 %s159_s3, 4  ;;  %s79_s24 = int_to_ptr.vmem [resolvable:$true] %s78_s24 }
  0x1d   :  { %v63_v8 = vld [vmem:[%s237_s5] sm:$0x3]  ;;  %s131_s4 = scalar_lea.vmem %s79_s24, 32  ;;  %p136_p11 = scmp.lt.s32.totalorder %s79_s24, %s79_s24 }
  0x1e   :  { %v60_v7 = vadd.f32 %v59_v4, %v58_v5  ;;  %v65_v10 = vld [vmem:[%s238_s6] sm:$0x3]  ;;  %p132_p10 = scmp.ne.s32.totalorder %s79_s24, %s131_s4  ;;  %p137_p12 = scmp.lt.s32.totalorder %s131_s4, %s131_s4 }
  0x1f   :  { %v67_v12 = vld [vmem:[%s239_s7] sm:$0x3] }
  0x20   :  { %v62_v9 = vadd.f32 %v61_v6, %v60_v7  ;;  %p138_p13 = por %p137_p12, %p136_p11 }
  0x22   :  { %v64_v11 = vadd.f32 %v63_v8, %v62_v9  ;;  %p139_p0 = pnand %p138_p13, %p132_p10 }
  0x24   :  { %v66_v13 = vadd.f32 %v65_v10, %v64_v11 }
  0x26   :  { %v68_v14 = vadd.f32 %v67_v12, %v66_v13 }
  0x28   :  { %v69_v15 = vmul.f32 0.125, %v68_v14 }
  0x2a   :  { %71 = vst.msk [vmem:[#allocation7] sm:$0x3] %vm70_vm0, %v69_v15 }
  0x2b   :  { %142 = shalt.err (!%p139_p0)
}
  0x2c   :  { %81 = dma.vmem_to_hbm [thread:$0]  %s79_s24, 32, %s240_s8, [#allocation4]  }
  0x2d   :  { %155 = dma.done.wait [#allocation4], 32  }
  0x2e   :  { %156 = vsyncadd [#allocation4], 4294967264 }
  0x2f   :  { %85 = vsyncpa [#allocation3], 1 }
  0x30   :  { %86 = vsyncpa [#allocation6], 1 }
  0x31   :  { %87 = vsyncpa [#allocation4], 1 }

</bundles_post_ra>
